<compile_context>
chip_gen: v7x
topology: tpu7x:2x2x1
jax: 0.10.0
libtpu: 0.0.40
codegen_flags: <defaults>
</compile_context>

<pallas_src>
import jax
import jax.numpy as jnp
from jax.experimental import pallas as pl
from jax.experimental.pallas import tpu as pltpu


def qnetwork_kernel(x_ref, w1_ref, b1_ref, w2_ref, b2_ref, w3_ref, b3_ref,
                    out_ref):
    # Hoisted, loop-invariant bias reads (kept in f32 for the add/ReLU path).
    b1 = b1_ref[...]
    b2 = b2_ref[...]
    b3 = b3_ref[...]

    # Weights arrive pre-cast to bf16 (VMEM-resident, no per-step cast).
    # Activations are cast per matmul; accumulation stays in f32.
    x = x_ref[...].astype(jnp.bfloat16)

    # Layer 1: (TM, 8*S) @ (8*S, 8*U) block-diag + (1, 8*U) -> relu
    h1 = jnp.dot(x, w1_ref[...], preferred_element_type=jnp.float32)
    h1 = jnp.maximum(h1 + b1, 0.0)

    # Layer 2: (TM, 8*U) @ (8*U, 8*U) block-diag + (1, 8*U) -> relu
    h2 = jnp.dot(h1.astype(jnp.bfloat16), w2_ref[...],
                 preferred_element_type=jnp.float32)
    h2 = jnp.maximum(h2 + b2, 0.0)

    # Layer 3: (TM, 8*U) @ (8*U, 8*A) block-diag + (1, 8*A)
    q = jnp.dot(h2.astype(jnp.bfloat16), w3_ref[...],
                preferred_element_type=jnp.float32)
    out_ref[...] = (q + b3).astype(out_ref.dtype)


def fold_params(params, fold=8):
    """Build the lane-folded parameter set ONCE.

    Weights become block-diagonal (fold copies of W on the diagonal), cast to
    bf16; biases are tiled along the lane dim and kept in f32.
    """
    def block_diag_bf16(w):
        eye = jnp.eye(fold, dtype=w.dtype)
        return jnp.kron(eye, w).astype(jnp.bfloat16)

    return {
        "w1": block_diag_bf16(params["w1"]),
        "b1": jnp.tile(params["b1"], (1, fold)),
        "w2": block_diag_bf16(params["w2"]),
        "b2": jnp.tile(params["b2"], (1, fold)),
        "w3": block_diag_bf16(params["w3"]),
        "b3": jnp.tile(params["b3"], (1, fold)),
    }


def qnetwork_forward(state, fparams, *, fold=8, tm=None):
    """state: (B, state_dim) f32; fparams: output of fold_params().

    Computes q = relu(relu(x@W1+b1)@W2+b2)@W3+b3, returning (B, action_dim).
    """
    w1, b1 = fparams["w1"], fparams["b1"]
    w2, b2 = fparams["w2"], fparams["b2"]
    w3, b3 = fparams["w3"], fparams["b3"]

    B, S = state.shape
    Sf = w1.shape[0]           # fold * state_dim
    Af = w3.shape[1]           # fold * action_dim
    assert Sf == fold * S, "folded params do not match state_dim / fold"
    A = Af // fold

    # Fold `fold` batch rows into the lane dim: (B, S) -> (B/fold, fold*S).
    # Pads at most fold-1 rows when B % fold != 0 (no pad for the common
    # multiple-of-8 batches).  NOTE: we never pad to a multiple of the batch
    # tile -- Pallas pads edge-block reads and masks edge-block writes, and
    # every row is independent, so partial tiles are safe.
    Bp = -(-B // fold) * fold
    x = jnp.pad(state, ((0, Bp - B), (0, 0))) if Bp != B else state
    Bf = Bp // fold
    xf = x.reshape(Bf, fold * S)

    # Batch tile in *folded* rows (1 folded row == `fold` batch rows).
    # Per-grid-step overhead dominates DMA at these layer widths, so use big
    # tiles; ensure >= 2 grid steps when possible so the "parallel" axis can
    # shard across v7x's two TensorCores.  Cap = 1024 folded rows = 8192
    # batch rows (~2 MiB of double-buffered VMEM, see header comment).
    if tm is None:
        if Bf <= 8:
            tm = Bf                                  # single full-extent block
        else:
            tm = min(1024, max(8, (-(-Bf // 2) + 7) // 8 * 8))
    else:
        tm = min(tm, Bf)
        if tm < Bf:                                  # keep (8,128) legality
            tm = max(8, (tm // 8) * 8)

    resident = lambda arr: pl.BlockSpec(arr.shape, lambda i: (0, 0))

    qf = pl.pallas_call(
        qnetwork_kernel,
        out_shape=jax.ShapeDtypeStruct((Bf, Af), state.dtype),
        grid=(pl.cdiv(Bf, tm),),
        in_specs=[pl.BlockSpec((tm, fold * S), lambda i: (i, 0)),
                  resident(w1), resident(b1),
                  resident(w2), resident(b2),
                  resident(w3), resident(b3)],
        out_specs=pl.BlockSpec((tm, Af), lambda i: (i, 0)),
        compiler_params=pltpu.CompilerParams(
            dimension_semantics=("parallel",)),
    )(xf, w1, b1, w2, b2, w3, b3)

    # Un-fold: (Bf, fold*A) -> (Bp, A) is a contiguous row-major reshape.
    q = qf.reshape(Bp, A)
    return q[:B] if Bp != B else q


def init_params(key, state_dim, units, action_dim):
    """Deterministic synthetic parameter init (PyTorch-Linear-like uniform).

    Weights are stored as (in_features, out_features) so y = x @ W + b
    (equivalent to PyTorch's x @ W.T with W:(out, in)).
    """
    ks = jax.random.split(key, 6)

    def lin(kw, kb, fan_in, fan_out):
        bound = 1.0 / jnp.sqrt(fan_in)
        w = jax.random.uniform(kw, (fan_in, fan_out), jnp.float32,
                               minval=-bound, maxval=bound)
        b = jax.random.uniform(kb, (1, fan_out), jnp.float32,
                               minval=-bound, maxval=bound)
        return w, b

    w1, b1 = lin(ks[0], ks[1], state_dim, units)
    w2, b2 = lin(ks[2], ks[3], units, units)
    w3, b3 = lin(ks[4], ks[5], units, action_dim)
    return {"w1": w1, "b1": b1, "w2": w2, "b2": b2, "w3": w3, "b3": b3}


def reference_forward(state, params):
    """Pure-JAX reference with the same bf16-operand / f32-accumulate math."""
    bf = jnp.bfloat16
    h = jnp.dot(state.astype(bf), params["w1"].astype(bf),
                preferred_element_type=jnp.float32) + params["b1"]
    h = jnp.maximum(h, 0.0)
    h = jnp.dot(h.astype(bf), params["w2"].astype(bf),
                preferred_element_type=jnp.float32) + params["b2"]
    h = jnp.maximum(h, 0.0)
    return jnp.dot(h.astype(bf), params["w3"].astype(bf),
                   preferred_element_type=jnp.float32) + params["b3"]


if __name__ == "__main__":
    # Small shapes consistent with the module: state_dim=16, units=32
    # (self.args.units), action_dim=4.  B=200 -> 25 folded rows, default
    # tm=16 -> a 2-step batch grid with a partial (masked) edge block, which
    # exercises both the megacore split and the no-pad edge handling.
    B, STATE_DIM, UNITS, ACTION_DIM = 200, 16, 32, 4
    FOLD = 8

    key = jax.random.PRNGKey(0)
    k_params, k_state = jax.random.split(key)
    params = init_params(k_params, STATE_DIM, UNITS, ACTION_DIM)
    state = jax.random.normal(k_state, (B, STATE_DIM), dtype=jnp.float32)

    fparams = fold_params(params, fold=FOLD)   # built once, reused every call
    q = qnetwork_forward(state, fparams, fold=FOLD)
    q = jax.block_until_ready(q)

    # Reference checks: tight vs. matching bf16/f32 math (block-diagonal
    # zeros contribute exactly 0, so the fold is numerically equivalent),
    # loose vs. all-f32 math (~0.5% relative error from bf16 operands).
    q_ref_bf16 = reference_forward(state, params)
    h = jnp.maximum(state @ params["w1"] + params["b1"], 0.0)
    h = jnp.maximum(h @ params["w2"] + params["b2"], 0.0)
    q_ref_f32 = h @ params["w3"] + params["b3"]

    assert q.shape == (B, ACTION_DIM)
    assert jnp.allclose(q, q_ref_bf16, atol=1e-2, rtol=1e-2)
    assert jnp.allclose(q, q_ref_f32, atol=5e-2, rtol=5e-2)

    print("KERNEL_OK")
</pallas_src>

<mosaic_0001>
module attributes {stable_mosaic.version = 11 : i64} {
  func.func @qnetwork_kernel(%arg0: i32, %arg1: memref<16x128xf32, #tpu.memory_space<vmem>>, %arg2: memref<128x256xbf16, #tpu.memory_space<vmem>>, %arg3: memref<1x256xf32, #tpu.memory_space<vmem>>, %arg4: memref<256x256xbf16, #tpu.memory_space<vmem>>, %arg5: memref<1x256xf32, #tpu.memory_space<vmem>>, %arg6: memref<256x32xbf16, #tpu.memory_space<vmem>>, %arg7: memref<1x32xf32, #tpu.memory_space<vmem>>, %arg8: memref<16x32xf32, #tpu.memory_space<vmem>>) attributes {dimension_semantics = [#tpu.dimension_semantics<parallel>], iteration_bounds = array<i64: 2>, scalar_prefetch = 0 : i64, scratch_operands = 0 : i64, tpu.core_type = #tpu.core_type<tc>, window_params = [{transform_indices = @transform_0, window_bounds = array<i64: 16, 128>}, {pipeline_mode = #tpu.pipeline_mode<synchronous>, transform_indices = @transform_1, window_bounds = array<i64: 128, 256>}, {pipeline_mode = #tpu.pipeline_mode<synchronous>, transform_indices = @transform_2, window_bounds = array<i64: 1, 256>}, {pipeline_mode = #tpu.pipeline_mode<synchronous>, transform_indices = @transform_3, window_bounds = array<i64: 256, 256>}, {pipeline_mode = #tpu.pipeline_mode<synchronous>, transform_indices = @transform_4, window_bounds = array<i64: 1, 256>}, {pipeline_mode = #tpu.pipeline_mode<synchronous>, transform_indices = @transform_5, window_bounds = array<i64: 256, 32>}, {pipeline_mode = #tpu.pipeline_mode<synchronous>, transform_indices = @transform_6, window_bounds = array<i64: 1, 32>}, {transform_indices = @transform_7, window_bounds = array<i64: 16, 32>}]} {
    %c0 = arith.constant 0 : index
    %c0_0 = arith.constant 0 : index
    %0 = vector.load %arg3[%c0, %c0_0] : memref<1x256xf32, #tpu.memory_space<vmem>>, vector<1x256xf32>
    %c0_1 = arith.constant 0 : index
    %c0_2 = arith.constant 0 : index
    %1 = vector.load %arg5[%c0_1, %c0_2] : memref<1x256xf32, #tpu.memory_space<vmem>>, vector<1x256xf32>
    %c0_3 = arith.constant 0 : index
    %c0_4 = arith.constant 0 : index
    %2 = vector.load %arg7[%c0_3, %c0_4] : memref<1x32xf32, #tpu.memory_space<vmem>>, vector<1x32xf32>
    %c0_5 = arith.constant 0 : index
    %c0_6 = arith.constant 0 : index
    %3 = vector.load %arg1[%c0_5, %c0_6] : memref<16x128xf32, #tpu.memory_space<vmem>>, vector<16x128xf32>
    %4 = arith.truncf %3 : vector<16x128xf32> to vector<16x128xbf16>
    %c0_7 = arith.constant 0 : index
    %c0_8 = arith.constant 0 : index
    %5 = vector.load %arg2[%c0_7, %c0_8] : memref<128x256xbf16, #tpu.memory_space<vmem>>, vector<128x256xbf16>
    %cst = arith.constant dense<0.000000e+00> : vector<16x256xf32>
    %6 = tpu.matmul %4, %5, %cst {dimension_numbers = #tpu.dot_dimension_numbers<[1], [0], [0], [1], [0, 0, 1, 1], [], []>} : vector<16x128xbf16>, vector<128x256xbf16>, vector<16x256xf32> -> vector<16x256xf32>
    %7 = vector.broadcast %0 : vector<1x256xf32> to vector<16x256xf32>
    %8 = arith.addf %6, %7 : vector<16x256xf32>
    %cst_9 = arith.constant 0.000000e+00 : f32
    %9 = vector.broadcast %cst_9 : f32 to vector<16x256xf32>
    %10 = arith.maximumf %8, %9 : vector<16x256xf32>
    %11 = arith.truncf %10 : vector<16x256xf32> to vector<16x256xbf16>
    %c0_10 = arith.constant 0 : index
    %c0_11 = arith.constant 0 : index
    %12 = vector.load %arg4[%c0_10, %c0_11] : memref<256x256xbf16, #tpu.memory_space<vmem>>, vector<256x256xbf16>
    %cst_12 = arith.constant dense<0.000000e+00> : vector<16x256xf32>
    %13 = tpu.matmul %11, %12, %cst_12 {dimension_numbers = #tpu.dot_dimension_numbers<[1], [0], [0], [1], [0, 0, 1, 1], [], []>} : vector<16x256xbf16>, vector<256x256xbf16>, vector<16x256xf32> -> vector<16x256xf32>
    %14 = vector.broadcast %1 : vector<1x256xf32> to vector<16x256xf32>
    %15 = arith.addf %13, %14 : vector<16x256xf32>
    %cst_13 = arith.constant 0.000000e+00 : f32
    %16 = vector.broadcast %cst_13 : f32 to vector<16x256xf32>
    %17 = arith.maximumf %15, %16 : vector<16x256xf32>
    %18 = arith.truncf %17 : vector<16x256xf32> to vector<16x256xbf16>
    %c0_14 = arith.constant 0 : index
    %c0_15 = arith.constant 0 : index
    %19 = vector.load %arg6[%c0_14, %c0_15] : memref<256x32xbf16, #tpu.memory_space<vmem>>, vector<256x32xbf16>
    %cst_16 = arith.constant dense<0.000000e+00> : vector<16x32xf32>
    %20 = tpu.matmul %18, %19, %cst_16 {dimension_numbers = #tpu.dot_dimension_numbers<[1], [0], [0], [1], [0, 0, 1, 1], [], []>} : vector<16x256xbf16>, vector<256x32xbf16>, vector<16x32xf32> -> vector<16x32xf32>
    %21 = vector.broadcast %2 : vector<1x32xf32> to vector<16x32xf32>
    %22 = arith.addf %20, %21 : vector<16x32xf32>
    %c0_17 = arith.constant 0 : index
    %c0_18 = arith.constant 0 : index
    %23 = vector.load %arg8[%c0_17, %c0_18] : memref<16x32xf32, #tpu.memory_space<vmem>>, vector<16x32xf32>
    tpu.vector_store %arg8[%c0_17, %c0_18], %22 {strides = array<i32>} : memref<16x32xf32, #tpu.memory_space<vmem>>, vector<16x32xf32>,
    return
  }
  func.func @transform_0(%arg0: i32) -> (i32, i32) {
    %c0_i32 = arith.constant 0 : i32
    %c0_i32_0 = arith.constant 0 : i32
    return %arg0, %c0_i32 : i32, i32
  }
  func.func @transform_1(%arg0: i32) -> (i32, i32) {
    %c0_i32 = arith.constant 0 : i32
    %c0_i32_0 = arith.constant 0 : i32
    %c0_i32_1 = arith.constant 0 : i32
    return %c0_i32, %c0_i32_0 : i32, i32
  }
  func.func @transform_2(%arg0: i32) -> (i32, i32) {
    %c0_i32 = arith.constant 0 : i32
    %c0_i32_0 = arith.constant 0 : i32
    %c0_i32_1 = arith.constant 0 : i32
    return %c0_i32, %c0_i32_0 : i32, i32
  }
  func.func @transform_3(%arg0: i32) -> (i32, i32) {
    %c0_i32 = arith.constant 0 : i32
    %c0_i32_0 = arith.constant 0 : i32
    %c0_i32_1 = arith.constant 0 : i32
    return %c0_i32, %c0_i32_0 : i32, i32
  }
  func.func @transform_4(%arg0: i32) -> (i32, i32) {
    %c0_i32 = arith.constant 0 : i32
    %c0_i32_0 = arith.constant 0 : i32
    %c0_i32_1 = arith.constant 0 : i32
    return %c0_i32, %c0_i32_0 : i32, i32
  }
  func.func @transform_5(%arg0: i32) -> (i32, i32) {
    %c0_i32 = arith.constant 0 : i32
    %c0_i32_0 = arith.constant 0 : i32
    %c0_i32_1 = arith.constant 0 : i32
    return %c0_i32, %c0_i32_0 : i32, i32
  }
  func.func @transform_6(%arg0: i32) -> (i32, i32) {
    %c0_i32 = arith.constant 0 : i32
    %c0_i32_0 = arith.constant 0 : i32
    %c0_i32_1 = arith.constant 0 : i32
    return %c0_i32, %c0_i32_0 : i32, i32
  }
  func.func @transform_7(%arg0: i32) -> (i32, i32) {
    %c0_i32 = arith.constant 0 : i32
    %c0_i32_0 = arith.constant 0 : i32
    return %arg0, %c0_i32 : i32, i32
  }
}

</mosaic_0001>

<bundles_post_ra>
// kernel: tpu_custom_call.1
= control target key start
LH: loop header
LB: loop body
LE: loop exit
PB: predicated region body
PF: predicated region fallthrough
CT: control target
= control target key end

     0   :  { %12 = vsyncpa [#allocation3], 0  ;;  %s1606_s0 = inlined_call_operand.vmem [shape: f32[25,128], index: 0, kind: input, shape index: {}]   ;;  %s1607_s1 = inlined_call_operand.vmem [shape: bf16[128,256], index: 1, kind: input, shape index: {}]   ;;  %s1608_s2 = inlined_call_operand.vmem [shape: f32[1,256], index: 2, kind: input, shape index: {}]   ;;  %s1609_s3 = inlined_call_operand.hbm [shape: bf16[256,256], index: 3, kind: input, shape index: {}]   ;;  %s1610_s4 = inlined_call_operand.vmem [shape: f32[1,256], index: 4, kind: input, shape index: {}]   ;;  %s1611_s5 = inlined_call_operand.vmem [shape: bf16[256,32], index: 5, kind: input, shape index: {}]   ;;  %s1612_s6 = inlined_call_operand.vmem [shape: f32[1,32], index: 6, kind: input, shape index: {}]   ;;  %s1613_s7 = inlined_call_operand.hbm [shape: f32[25,32], index: 7, kind: output, shape index: {}]  }
   0x1   :  { %13 = vsyncpa [#allocation4], 0 }
   0x2   :  { %15 = vsyncpa [#allocation4 + $0x1], 0  ;;  %s1364_s24 = smov 0   ;;  %s1366_s25 = smov 0  }
   0x3   :  { %s1368_s26 = smov 0   ;;  %s1370_s27 = smov 0  }
   0x4 LB: > { %s1385_s28 = sadd.s32 4294967295, %s1315_s27   ;;  %s976_s29 = sadd.s32 4294967294, %s1315_s27   ;;  %s1315_s27 = sphi %s1370_s27, %s1629_s27   ;;  %s1311_s26 = sphi %s1368_s26, %s1628_s26   ;;  %s1307_s25 = sphi %s1366_s25, %s1627_s25   ;;  %s1303_s24 = sphi %s1364_s24, %s1626_s24  }
   0x5   : > { %s1389_s30 = sadd.s32 1, %s1315_s27   ;;  %s180_s8 = sadd.s32 1, %s1311_s26 }
   0x6   : > { %s177_s9 = ssub.s32 %s1315_s27, %s1389_s30  ;;  %p190_p0 = scmp.ne.s32.totalorder %s1311_s26, %s1307_s25 }
   0x7   : > { %p178_p1 = scmp.eq.s32.totalorder %s177_s9, 0  ;;  %p191_p2 = scmp.eq.s32.totalorder %s1385_s28, 1 }
   0x8   : > { %p196_p3 = scmp.ne.s32.totalorder %s1307_s25, %s1303_s24  ;;  %p197_p4 = scmp.eq.s32.totalorder %s976_s29, 1 }
   0x9   : > { %s1400_s10 = scalar_select %p178_p1, %s1311_s26, %s180_s8  }
   0xa   : > { %p1402_p5 = por %p191_p2, %p190_p0  ;;  %p1406_p6 = por %p197_p4, %p196_p3 }
   0xb   : > { %p977_p7 = scmp.ge.s32.totalorder %s1315_s27, 1  ;;  %p204_p8 = scmp.lt.s32.totalorder %s1315_s27, 3 }
   0xc   : > { %s1617_s11 = scalar_select %p1402_p5, 1, 0 }
   0xd   : > { %s1618_s12 = scalar_select %p1406_p6, 1, 0 }
   0xe   : > { %p1614_p9 = scmp.eq.s32.totalorder %s1385_s28, 0  ;;  %p1413_p10 = pnand %p977_p7, %p204_p8 }
   0xf   : > { %s1317_s14 = smov [#allocation2]   ;;  %s1221_s19 = scalar_lea.hbm %s1609_s3, 4096 }
  0x10   : > { %s1619_s13 = scalar_select %p1413_p10, 1, 0 }
  0x11   : > { %s222_s15 = sshll.u32 %s1317_s14, 4  ;;  %p1084_p11 = pneg %p1413_p10  ;;  %s223_s15 = int_to_ptr.vmem [resolvable:$true] %s222_s15 }
  0x12   : > { %p1222_p13 = scmp.ne.s32.totalorder %s1609_s3, %s1221_s19  ;;  %p1228_p3 = scmp.lt.u32.totalorder %s1221_s19, %s1609_s3 }
  0x13   : > { %p1421_p12 = pnand %p1614_p9, %p1084_p11 }
  0x15   : > { %p1223_p0 = pneg %p1421_p12 }
  0x17   : > { %p1224_p1 = pnand %p1223_p0, %p1222_p13 }
  0x19   : > { %p1225_p2 = pneg %p1224_p1 }
  0x1b   : > { %p1230_p4 = pnand %p1228_p3, %p1225_p2 }
  0x1d   : > { %1233 = shalt.err (!%p1230_p4)
}
  0x1e   : > { %s1234_s29 = scalar_lea.vmem %s223_s15, 4096  ;;  %p1242_p9 = scmp.lt.s32.totalorder %s223_s15, %s223_s15 }
  0x1f   : > { %p1235_p7 = scmp.ne.s32.totalorder %s223_s15, %s1234_s29  ;;  %p1243_p6 = scmp.lt.s32.totalorder %s1234_s29, %s1234_s29 }
  0x21   : > { %p1237_p8 = pnand %p1235_p7, %p1223_p0  ;;  %p1244_p5 = por %p1243_p6, %p1242_p9 }
  0x23   : > { %p1238_p11 = pneg %p1237_p8 }
  0x25   : > { %p1245_p10 = pnand %p1244_p5, %p1238_p11 }
  0x27   : > { %1248 = shalt.err (!%p1245_p10)
}
  0x28   : > { %s1318_s8 = smov 128   ;;  %s1319_s9 = smov 8  }
  0x29   : > { %1087 = dma.hbm_to_vmem [thread:$0]  (!%p1421_p12), %s1609_s3, 4096, %s223_s15, [#allocation3], %s1318_s8, %s1318_s8, %s1319_s9  }
  0x2a   : > { %p1621_p13 = scmp.ne.s32.totalorder %s1619_s13, 0 }
  0x2b   : > { %p1622_p1 = scmp.eq.s32.totalorder (!%p1621_p13), %s1385_s28, 0 }
  0x2c   : > { %256 = sbr.rel (%p1621_p13) target bundleno = 763 (0x2fb), region = 48 }
  0x33   : > { %1294 = dma.done.wait (%p1622_p1), [#allocation3], 4096   ;;  %p1623_p0 = pmov %p1622_p1 }
  0x34   : > { %v1320_v0 = vmov 0   ;;  %v1133_v1 = vld [vmem:[%s1607_s1 + $0x4] ss:$8 sps:$4 sm:$0xff]   ;;  %v1135_v2 = vld [vmem:[%s1607_s1] ss:$8 sps:$4 sm:$0xff]   ;;  %s983_s18 = sshll.u32 %s1385_s28, 1  ;;  %v319_v63 = vlaneseq }
  0x35   : > { %1296 = vsyncadd (%p1623_p0), [#allocation3], 4294963200  ;;  %441 = vmatprep.mubr.bf16.mxu0 %v1320_v0  ;;  %409 = vmatprep.subr.bf16.mxu0 %v1133_v1  ;;  %v1136_v3 = vld [vmem:[%s1607_s1 + $0x14] ss:$8 sps:$4 sm:$0xff]   ;;  %v1138_v4 = vld [vmem:[%s1607_s1 + $0x10] ss:$8 sps:$4 sm:$0xff]  }
  0x36   : > { %410 = vmatpush1.bf16.msra.mxu0 %v1135_v2  ;;  %v1139_v5 = vld [vmem:[%s1607_s1 + $0x24] ss:$8 sps:$4 sm:$0xff]   ;;  %v1141_v6 = vld [vmem:[%s1607_s1 + $0x20] ss:$8 sps:$4 sm:$0xff]   ;;  %v1142_v7 = vld [vmem:[%s1607_s1 + $0x34] ss:$8 sps:$4 sm:$0xff]  }
  0x37   : > { %411 = vmatprep.subr.bf16.mxu0 %v1136_v3  ;;  %v1144_v8 = vld [vmem:[%s1607_s1 + $0x30] ss:$8 sps:$4 sm:$0xff]   ;;  %v1145_v9 = vld [vmem:[%s1607_s1 + $0x44] ss:$8 sps:$4 sm:$0xff]   ;;  %p289_p5 = scmp.lt.s32.totalorder %s983_s18, 3  ;;  %v320_v0 = vshrl.u32 %v319_v63, 7 }
  0x38   : > { %v1157_v10 = vld [vmem:[#allocation2 + $0x4] ss:$8 sps:$4 sm:$0xff]   ;;  %v1159_v11 = vld [vmem:[#allocation2] ss:$8 sps:$4 sm:$0xff]   ;;  %v1160_v12 = vld [vmem:[#allocation2 + $0x14] ss:$8 sps:$4 sm:$0xff]  }
  0x39   : > { %v1147_v13 = vld [vmem:[%s1607_s1 + $0x40] ss:$8 sps:$4 sm:$0xff]   ;;  %661 = vmatprep.subr.bf16.mxu1 %v1157_v10  ;;  %s1631_s18 = smov (!%p289_p5, %s983_s18), 3  ;;  %v1162_v14 = vld [vmem:[#allocation2 + $0x10] ss:$8 sps:$4 sm:$0xff]   ;;  %v321_v1 = vsub.s32 0, %v320_v0 }
  0x3a   : > { %412 = vmatpush1.bf16.msra.mxu0 %v1138_v4  ;;  %662 = vmatpush1.bf16.msra.mxu1 %v1159_v11  ;;  %v1148_v15 = vld [vmem:[%s1607_s1 + $0x54] ss:$8 sps:$4 sm:$0xff]   ;;  %v1163_v16 = vld [vmem:[#allocation2 + $0x24] ss:$8 sps:$4 sm:$0xff]   ;;  %v1150_v17 = vld [vmem:[%s1607_s1 + $0x50] ss:$8 sps:$4 sm:$0xff]  }
  0x3b   : > { %413 = vmatprep.subr.bf16.mxu0 %v1139_v5  ;;  %663 = vmatprep.subr.bf16.mxu1 %v1160_v12  ;;  %s984_s9 = sshll.u32 %s1631_s18, 3  ;;  %v1165_v18 = vld [vmem:[#allocation2 + $0x20] ss:$8 sps:$4 sm:$0xff]   ;;  %v1151_v19 = vld [vmem:[%s1607_s1 + $0x64] ss:$8 sps:$4 sm:$0xff]   ;;  %v1209_v56 = vld [vmem:[%s1611_s5 + $0x50] sm:$0xff]  }
  0x3c   : > { %v1166_v20 = vld [vmem:[#allocation2 + $0x34] ss:$8 sps:$4 sm:$0xff]   ;;  %v1153_v21 = vld [vmem:[%s1607_s1 + $0x60] ss:$8 sps:$4 sm:$0xff]   ;;  %s292_s15 = scalar_lea.vmem %s1606_s0, %s984_s9  ;;  %v1168_v22 = vld [vmem:[#allocation2 + $0x30] ss:$8 sps:$4 sm:$0xff]  }
  0x3d   : > { %v1154_v23 = vld [vmem:[%s1607_s1 + $0x74] ss:$8 sps:$4 sm:$0xff]   ;;  %v1169_v24 = vld [vmem:[#allocation2 + $0x44] ss:$8 sps:$4 sm:$0xff]   ;;  %v1156_v25 = vld [vmem:[%s1607_s1 + $0x70] ss:$8 sps:$4 sm:$0xff]  }
  0x3e   : > { %414 = vmatpush1.bf16.msra.mxu0 %v1141_v6  ;;  %664 = vmatpush1.bf16.msra.mxu1 %v1162_v14  ;;  %v299_v26 = vld [vmem:[%s292_s15] sm:$0xff]  ;;  %v300_v27 = vld [vmem:[%s292_s15 + $0x8] sm:$0xff]  ;;  %v1172_v29 = vld [vmem:[#allocation2 + $0x54] ss:$8 sps:$4 sm:$0xff]   ;;  %v325_v3 = vsub.s32 1, %v320_v0  ;;  %s285_s13 = sand.u32 1, %s1307_s25  }
  0x3f   : > { %415 = vmatprep.subr.bf16.mxu0 %v1142_v7  ;;  %665 = vmatprep.subr.bf16.mxu1 %v1163_v16  ;;  %v1171_v28 = vld [vmem:[#allocation2 + $0x40] ss:$8 sps:$4 sm:$0xff]   ;;  %v1174_v30 = vld [vmem:[#allocation2 + $0x50] ss:$8 sps:$4 sm:$0xff]   ;;  %v301_v31 = vpack.c.bf16 %v300_v27, %v299_v26  ;;  %v1175_v32 = vld [vmem:[#allocation2 + $0x64] ss:$8 sps:$4 sm:$0xff]  }
  0x40   : > { %v1177_v33 = vld [vmem:[#allocation2 + $0x60] ss:$8 sps:$4 sm:$0xff]   ;;  %v1178_v34 = vld [vmem:[#allocation2 + $0x74] ss:$8 sps:$4 sm:$0xff]   ;;  %v1180_v35 = vld [vmem:[#allocation2 + $0x70] ss:$8 sps:$4 sm:$0xff]  }
  0x41   : > { %v1181_v36 = vld [vmem:[#allocation2 + $0x84] ss:$8 sps:$4 sm:$0xff]   ;;  %v1183_v37 = vld [vmem:[#allocation2 + $0x80] ss:$8 sps:$4 sm:$0xff]   ;;  %v1184_v38 = vld [vmem:[#allocation2 + $0x94] ss:$8 sps:$4 sm:$0xff]  }
  0x42   : > { %416 = vmatpush1.bf16.msra.mxu0 %v1144_v8  ;;  %666 = vmatpush1.bf16.msra.mxu1 %v1165_v18  ;;  %v1186_v39 = vld [vmem:[#allocation2 + $0x90] ss:$8 sps:$4 sm:$0xff]   ;;  %v1187_v40 = vld [vmem:[#allocation2 + $0xa4] ss:$8 sps:$4 sm:$0xff]   ;;  %v1189_v41 = vld [vmem:[#allocation2 + $0xa0] ss:$8 sps:$4 sm:$0xff]  }
  0x43   : > { %417 = vmatprep.subr.bf16.mxu0 %v1145_v9  ;;  %667 = vmatprep.subr.bf16.mxu1 %v1166_v20  ;;  %v1190_v42 = vld [vmem:[#allocation2 + $0xb4] ss:$8 sps:$4 sm:$0xff]   ;;  %v1192_v43 = vld [vmem:[#allocation2 + $0xb0] ss:$8 sps:$4 sm:$0xff]   ;;  %v1193_v44 = vld [vmem:[#allocation2 + $0xc4] ss:$8 sps:$4 sm:$0xff]  }
  0x44   : > { %v1195_v45 = vld [vmem:[#allocation2 + $0xc0] ss:$8 sps:$4 sm:$0xff]   ;;  %v1196_v46 = vld [vmem:[#allocation2 + $0xd4] ss:$8 sps:$4 sm:$0xff]   ;;  %v1198_v47 = vld [vmem:[#allocation2 + $0xd0] ss:$8 sps:$4 sm:$0xff]  }
  0x45   : > { %v1199_v48 = vld [vmem:[#allocation2 + $0xe4] ss:$8 sps:$4 sm:$0xff]   ;;  %v1201_v49 = vld [vmem:[#allocation2 + $0xe0] ss:$8 sps:$4 sm:$0xff]   ;;  %v1202_v50 = vld [vmem:[#allocation2 + $0xf4] ss:$8 sps:$4 sm:$0xff]  }
  0x46   : > { %418 = vmatpush1.bf16.msra.mxu0 %v1147_v13  ;;  %668 = vmatpush1.bf16.msra.mxu1 %v1168_v22  ;;  %v1204_v51 = vld [vmem:[#allocation2 + $0xf0] ss:$8 sps:$4 sm:$0xff]   ;;  %v1205_v52 = vld [vmem:[%s1611_s5 + $0x40] sm:$0xff]   ;;  %v1207_v54 = vld [vmem:[%s1611_s5 + $0x48] sm:$0xff]   ;;  %s982_s15 = sshll.u32 %s285_s13, 4  ;;  %s1055_s22 = sshll.u32 %s1385_s28, 8 }
  0x47   : > { %419 = vmatprep.subr.bf16.mxu0 %v1148_v15  ;;  %669 = vmatprep.subr.bf16.mxu1 %v1169_v24  ;;  %v1206_v53 = vld [vmem:[%s1611_s5] sm:$0xff]   ;;  %v1208_v55 = vld [vmem:[%s1611_s5 + $0x8] sm:$0xff]   ;;  %v1210_v57 = vld [vmem:[%s1611_s5 + $0x10] sm:$0xff]   ;;  %s287_s23 = scalar_lea.vmem [#allocation5], %s982_s15  ;;  %vm885_vm0 = vcmask 261120   ;;  %s1561_s14 = scalar_lea.hbm %s1613_s7, %s1055_s22 }
  0x48   : > { %v1211_v58 = vld [vmem:[%s1611_s5 + $0x58] sm:$0xff]   ;;  %v1213_v60 = vld [vmem:[%s1611_s5 + $0x60] sm:$0xff]   ;;  %v1215_v62 = vld [vmem:[%s1611_s5 + $0x68] sm:$0xff]   ;;  %s902_s29 = sshll.u32 %s287_s23, 4  ;;  %s1565_s28 = scalar_lea.sflag [#allocation4], %s285_s13  ;;  %s1563_s29 = int_to_ptr.vmem [resolvable:$true] %s902_s29 }
  0x49   : > { %v1212_v59 = vld [vmem:[%s1611_s5 + $0x18] sm:$0xff]   ;;  %v1214_v61 = vld [vmem:[%s1611_s5 + $0x20] sm:$0xff]   ;;  %v1216_v20 = vld [vmem:[%s1611_s5 + $0x28] sm:$0xff]   ;;  %s1249_s17 = scalar_lea.vmem %s1563_s29, 256  ;;  %p1624_p9 = scmp.ne.s32.totalorder %s1617_s11, 0 }
  0x4a   : > { %420 = vmatpush1.bf16.msra.mxu0 %v1150_v17  ;;  %670 = vmatpush1.bf16.msra.mxu1 %v1171_v28  ;;  %v296_v2 = vld [vmem:[%s1608_s2] sm:$0x3]  ;;  %v1218_v22 = vld [vmem:[%s1611_s5 + $0x30] sm:$0xff]   ;;  %v1220_v24 = vld [vmem:[%s1611_s5 + $0x38] sm:$0xff]   ;;  %p1250_p6 = scmp.ne.s32.totalorder %s1563_s29, %s1249_s17  ;;  %s1321_s19 = smov [#allocation5]  }
  0x4b   : > { %421 = vmatprep.subr.bf16.mxu0 %v1151_v19  ;;  %671 = vmatprep.subr.bf16.mxu1 %v1172_v29  ;;  %v322_v4 = vrot.slane %v296_v2, %v321_v1  ;;  %v326_v5 = vrot.slane %v296_v2, %v325_v3  ;;  %s1253_s16 = sshll.u32 %s1321_s19, 4  ;;  %s1254_s16 = int_to_ptr.vmem [resolvable:$false] %s1253_s16 }
  0x4c   : > { %p1251_p10 = pnand %p1250_p6, %p1624_p9  ;;  %s1255_s20 = scalar_lea.vmem %s1254_s16, 512 }
  0x4d   : > { %p1256_p2 = scmp.lt.s32.totalorder %s1563_s29, %s1254_s16  ;;  %p1257_p3 = scmp.lt.s32.totalorder %s1255_s20, %s1249_s17 }
  0x4e   : > { %422 = vmatpush1.bf16.msra.mxu0 %v1153_v21  ;;  %672 = vmatpush1.bf16.msra.mxu1 %v1174_v30  ;;  %v1217_v21 = vld [vmem:[%s1611_s5 + $0x70] sm:$0xff]   ;;  %p1252_p12 = pneg %p1251_p10 }
  0x4f   : > { %423 = vmatprep.subr.bf16.mxu0 %v1154_v23  ;;  %673 = vmatprep.subr.bf16.mxu1 %v1175_v32  ;;  %v1219_v23 = vld [vmem:[%s1611_s5 + $0x78] sm:$0xff]   ;;  %p1258_p4 = por %p1257_p3, %p1256_p2 }
  0x51   : > { %p1259_p7 = pnand %p1258_p4, %p1252_p12 }
  0x52   : > { %424 = vmatpush1.bf16.msra.mxu0 %v1156_v25  ;;  %674 = vmatpush1.bf16.msra.mxu1 %v1177_v33  ;;  %v297_v25 = vld [vmem:[%s1610_s4] sm:$0x3] }
  0x53   : > { %675 = vmatprep.subr.bf16.mxu1 %v1178_v34  ;;  %1056 = vmatprep.subr.bf16.mxu0 %v1205_v52  ;;  %v494_v26 = vrot.slane %v297_v25, %v321_v1  ;;  %v498_v27 = vrot.slane %v297_v25, %v325_v3 }
  0x55   : > { %442 = vmatmul.mubr.bf16.vlgmr.msra.gmra.mrb[0].mxu0 %v301_v31 }
  0x56   : > { %676 = vmatpush1.bf16.msra.mxu1 %v1180_v35  ;;  %1057 = vmatpush3.bf16.msra.mxu0 %v1206_v53 }
  0x57   : > { %677 = vmatprep.subr.bf16.mxu1 %v1181_v36  ;;  %1058 = vmatprep.subr.bf16.mxu0 %v1207_v54 }
  0x5a   : > { %678 = vmatpush1.bf16.msra.mxu1 %v1183_v37  ;;  %1059 = vmatpush3.bf16.msra.mxu0 %v1208_v55 }
  0x5b   : > { %679 = vmatprep.subr.bf16.mxu1 %v1184_v38  ;;  %1060 = vmatprep.subr.bf16.mxu0 %v1209_v56 }
  0x5e   : > { %680 = vmatpush1.bf16.msra.mxu1 %v1186_v39  ;;  %1061 = vmatpush3.bf16.msra.mxu0 %v1210_v57 }
  0x5f   : > { %681 = vmatprep.subr.bf16.mxu1 %v1187_v40  ;;  %1062 = vmatprep.subr.bf16.mxu0 %v1211_v58 }
  0x62   : > { %682 = vmatpush1.bf16.msra.mxu1 %v1189_v41  ;;  %1063 = vmatpush3.bf16.msra.mxu0 %v1212_v59 }
  0x63   : > { %683 = vmatprep.subr.bf16.mxu1 %v1190_v42  ;;  %1064 = vmatprep.subr.bf16.mxu0 %v1213_v60 }
  0x66   : > { %684 = vmatpush1.bf16.msra.mxu1 %v1192_v43  ;;  %1065 = vmatpush3.bf16.msra.mxu0 %v1214_v61  ;;  %v1033_v43 = vld [vmem:[%s1612_s6] ss:$0 sm:$0xff] }
  0x67   : > { %685 = vmatprep.subr.bf16.mxu1 %v1193_v44  ;;  %1066 = vmatprep.subr.bf16.mxu0 %v1215_v62 }
  0x6a   : > { %686 = vmatpush1.bf16.msra.mxu1 %v1195_v45  ;;  %1067 = vmatpush3.bf16.msra.mxu0 %v1216_v20 }
  0x6b   : > { %687 = vmatprep.subr.bf16.mxu1 %v1196_v46  ;;  %1068 = vmatprep.subr.bf16.mxu0 %v1217_v21 }
  0x6e   : > { %688 = vmatpush1.bf16.msra.mxu1 %v1198_v47  ;;  %1069 = vmatpush3.bf16.msra.mxu0 %v1218_v22 }
  0x6f   : > { %689 = vmatprep.subr.bf16.mxu1 %v1199_v48  ;;  %1070 = vmatprep.subr.bf16.mxu0 %v1219_v23 }
  0x72   : > { %690 = vmatpush1.bf16.msra.mxu1 %v1201_v49  ;;  %1071 = vmatpush3.bf16.msra.mxu0 %v1220_v24 }
  0x73   : > { %691 = vmatprep.subr.bf16.mxu1 %v1202_v50 }
  0x76   : > { %692 = vmatpush1.bf16.msra.mxu1 %v1204_v51 }
 0x128   : > { %v443_v6 = vpop.f32.mrb[0].mxu0 }
 0x129   : > { %v444_v7 = vadd.f32 %v443_v6, %v322_v4  ;;  %v445_v8 = vpop.f32.mrb[1].mxu0 }
 0x12a   : > { %v446_v9 = vadd.f32 %v445_v8, %v326_v5  ;;  %v447_v10 = vpop.f32.mrb[2].mxu0 }
 0x12b   : > { %v448_v11 = vadd.f32 %v447_v10, %v322_v4  ;;  %v449_v12 = vpop.f32.mrb[3].mxu0  ;;  %v452_v14 = vmax.f32 %v444_v7, 0.0 }
 0x12c   : > { %v450_v13 = vadd.f32 %v449_v12, %v326_v5  ;;  %v453_v16 = vmax.f32 %v446_v9, 0.0 }
 0x12d   : > { %v454_v15 = vmax.f32 %v448_v11, 0.0 }
 0x12e   : > { %v455_v17 = vmax.f32 %v450_v13, 0.0 }
 0x12f   : > { %v456_v18 = vpack.c.bf16 %v454_v15, %v452_v14 }
 0x130   : > { %v457_v19 = vpack.c.bf16 %v455_v17, %v453_v16 }
 0x132   : > { %693 = vmatprep.mubr.bf16.mxu1 %v457_v19 }
 0x133   : > { %694 = vmatmul.mubr.bf16.vlgmr.msra.gmra.mrb[0].mxu1 %v456_v18 }
 0x206   : > { %v695_v28 = vpop.f32.mrb[0].mxu1 }
 0x207   : > { %v696_v29 = vadd.f32 %v695_v28, %v494_v26  ;;  %v697_v30 = vpop.f32.mrb[1].mxu1 }
 0x208   : > { %v698_v31 = vadd.f32 %v697_v30, %v498_v27  ;;  %v699_v32 = vpop.f32.mrb[2].mxu1 }
 0x209   : > { %v700_v33 = vadd.f32 %v699_v32, %v494_v26  ;;  %v701_v34 = vpop.f32.mrb[3].mxu1  ;;  %v704_v36 = vmax.f32 %v696_v29, 0.0 }
 0x20a   : > { %v702_v35 = vadd.f32 %v701_v34, %v498_v27  ;;  %v705_v38 = vmax.f32 %v698_v31, 0.0 }
 0x20b   : > { %v706_v37 = vmax.f32 %v700_v33, 0.0 }
 0x20c   : > { %v707_v39 = vmax.f32 %v702_v35, 0.0 }
 0x20d   : > { %v708_v40 = vpack.c.bf16 %v706_v37, %v704_v36 }
 0x20e   : > { %v709_v41 = vpack.c.bf16 %v707_v39, %v705_v38 }
 0x210   : > { %876 = vmatprep.mubr.bf16.mxu0 %v709_v41 }
 0x211   : > { %877 = vmatmul.mubr.bf16.vlgmr.msra.gmra.mrb[4].mxu0 %v708_v40 }
 0x2e4   : > { %v1072_v42 = vpop.f32.mrb[4].mxu0 }
 0x2e5   : > { %v1073_v44 = vpop.f32.mrb[5].mxu0 }
 0x2e6   : > { %v1074_v45 = vadd.f32 %v1073_v44, %v1072_v42  ;;  %v1075_v46 = vpop.f32.mrb[6].mxu0 }
 0x2e7   : > { %v1076_v47 = vpop.f32.mrb[7].mxu0 }
 0x2e8   : > { %v879_v48 = vadd.f32 %v1074_v45, %v1033_v43  ;;  %v1077_v49 = vadd.f32 %v1076_v47, %v1075_v46 }
 0x2ea   : > { %886 = vst.msk [vmem:[%s287_s23] sm:$0xff] %vm885_vm0, %v879_v48  ;;  %v882_v50 = vadd.f32 %v1077_v49, %v1033_v43 }
 0x2ec   : > { %887 = vst.msk [vmem:[%s287_s23 + $0x8] sm:$0xff] %vm885_vm0, %v882_v50 }
 0x2ed   : > { %1262 = shalt.err (!%p1259_p7)
}
 0x2ee   : > { %s1263_s13 = scalar_lea.hbm %s1561_s14, 256  ;;  %s1267_s21 = scalar_lea.hbm %s1613_s7, 512 }
 0x2ef   : > { %p1264_p8 = scmp.ne.s32.totalorder %s1561_s14, %s1263_s13  ;;  %p1268_p1 = scmp.lt.u32.totalorder %s1561_s14, %s1613_s7 }
 0x2f0   : > { %p1269_p0 = scmp.lt.u32.totalorder %s1267_s21, %s1263_s13  ;;  %p1271_p6 = scmp.lt.u32.totalorder %s1263_s13, %s1561_s14 }
 0x2f1   : > { %p1265_p11 = pnand %p1264_p8, %p1624_p9 }
 0x2f2   : > { %p1270_p5 = por %p1269_p0, %p1268_p1 }
 0x2f3   : > { %p1266_p13 = pneg %p1265_p11 }
 0x2f4   : > { %p1272_p10 = por %p1271_p6, %p1270_p5 }
 0x2f6   : > { %p1273_p12 = pnand %p1272_p10, %p1266_p13 }
 0x2f8   : > { %1276 = shalt.err (!%p1273_p12)
}
 0x2f9   : > { %s1322_s8 = smov 128   ;;  %s1323_s9 = smov 8  }
 0x2fa   : > { %1082 = dma.vmem_to_hbm [thread:$0]  (%p1624_p9), %s1563_s29, 256, %s1561_s14, %s1565_s28, %s1322_s8, %s1322_s8, %s1323_s9  }
 0x2fb PF: > { %p1094_p2 = scmp.ge.s32.totalorder %s1315_s27, 2  ;;  %s917_s17 = sand.u32 1, %s1303_s24  }
 0x2fc   : > { %p1625_p3 = scmp.ne.s32.totalorder %s1618_s12, 0  ;;  %s918_s19 = scalar_lea.sflag [#allocation4], %s917_s17 }
 0x2fe   : > { %p1089_p4 = pnand %p1094_p2, %p1625_p3 }
 0x300   : > { %1298 = dma.done.wait (!%p1089_p4), %s918_s19, 256  }
 0x301   : > { %1300 = vsyncadd (!%p1089_p4), %s918_s19, 4294967040  ;;  %p18_p7 = scmp.ge.s32.totalorder %s1389_s30, 4   ;;  %s1626_s24 = smov %s1307_s25 }
 0x302   : > { %s1627_s25 = smov %s1311_s26  ;;  %s1628_s26 = smov %s1400_s10 }
 0x303   : > { %s1629_s27 = smov %s1389_s30  ;;  %20 = sbr.rel (!%p18_p7) target bundleno = 4 (0x4), region = 88 }
 0x30a   :  { %923 = vsyncpa [#allocation3], 1 }
 0x30b   :  { %925 = vsyncpa [#allocation3 + $0x1], 1 }
 0x30c   :  { %926 = vsyncpa [#allocation4], 1 }
 0x30d   :  { %928 = vsyncpa [#allocation4 + $0x1], 1 }

</bundles_post_ra>
